<compile_context>
chip_gen: v6e
topology: v6e:2x2x1
jax: 0.10.0
libtpu: 0.0.40
codegen_flags: <defaults>
</compile_context>

<pallas_src>
import functools

import jax
import jax.numpy as jnp
from jax.experimental import pallas as pl
from jax.experimental.pallas import tpu as pltpu


def _mean_pool_kernel(x_ref, o_ref, *, inv_t):
    # x_ref: (T, tile_n) slab of batch 0;  o_ref: (1, tile_n).
    # Cast the whole loaded tile to f32 (vectorized; no-op for f32 input),
    # reduce over T, scale by the exact literal 1/T, lane-dense store.
    xs = x_ref[...].astype(jnp.float32)
    o_ref[...] = (jnp.sum(xs, axis=0, keepdims=True) * inv_t).astype(o_ref.dtype)


def _pick_tile_n(n, t, itemsize, target_bytes=1 << 21):
    """Largest lane-dense (multiple-of-128) tile over the flattened feature axis.

    Keeps the per-step (T, tile_n) input slab around `target_bytes` and, when
    the axis is splittable, leaves at least 2 grid steps so the 'parallel'
    grid axis can shard across v7x's two TensorCores.
    """
    if n % 128 != 0:
        # Full-extent block along the last dim is always legal.
        return n
    cap = (target_bytes // max(1, t * itemsize)) // 128 * 128
    cap = max(128, min(n, cap))
    if n >= 256:
        half = (n // 2) // 128 * 128
        if half >= 128:
            cap = min(cap, half)
    tile = 128
    cand = cap
    while cand >= 128:
        if n % cand == 0:
            tile = cand
            break
        cand -= 128
    return tile


def mean_pool_temporal_encoding(x, doy=None, mask=None):
    """features = mean(x, axis=1)[0] (shape (C, H, W)); doy/mask are unused."""
    B, T, C, H, W = x.shape
    N = C * H * W

    # Free (no-copy) reshape: flatten (C, H, W) into one lane-dense axis.
    x_flat = x.reshape(B, T, N)

    tile_n = _pick_tile_n(N, T, jnp.dtype(x.dtype).itemsize)
    grid = (N // tile_n,)

    kernel = functools.partial(_mean_pool_kernel, inv_t=1.0 / T)

    out = pl.pallas_call(
        kernel,
        out_shape=jax.ShapeDtypeStruct((1, N), x.dtype),
        grid_spec=pltpu.PrefetchScalarGridSpec(
            num_scalar_prefetch=0,
            grid=grid,
            # Batch 0 is selected in the index_map (leading dim squeezed with
            # None), so only batch 0 is ever read from HBM — no wrapper slice.
            in_specs=[pl.BlockSpec((None, T, tile_n), lambda i: (0, 0, i))],
            out_specs=pl.BlockSpec((1, tile_n), lambda i: (0, i)),
        ),
        compiler_params=pltpu.CompilerParams(
            dimension_semantics=("parallel",),
        ),
    )(x_flat)

    features = out.reshape(C, H, W)
    return {"features": features, "attention_mask": None}


if __name__ == "__main__":
    key = jax.random.PRNGKey(0)
    kx, kd, km = jax.random.split(key, 3)

    B, T, C, H, W = 2, 8, 4, 16, 16
    x = jax.random.normal(kx, (B, T, C, H, W), dtype=jnp.float32)
    doy = jax.random.randint(kd, (B, T), 0, 365)          # unused by forward
    mask = (jax.random.uniform(km, (B, T)) > 0.5)          # unused by forward

    out = mean_pool_temporal_encoding(x, doy, mask)
    feats = jax.block_until_ready(out["features"])

    # Correctness check vs. pure-JAX reference of the exact PyTorch semantics.
    ref = jnp.mean(x, axis=1)[0]
    assert feats.shape == (C, H, W)
    assert out["attention_mask"] is None
    assert jnp.allclose(feats, ref, atol=1e-6, rtol=1e-6)

    print("KERNEL_OK")
</pallas_src>

<mosaic_0001>
module attributes {stable_mosaic.version = 11 : i64} {
  func.func @_mean_pool_kernel(%arg0: i32, %arg1: memref<1x8x512xf32, #tpu.memory_space<vmem>>, %arg2: memref<1x512xf32, #tpu.memory_space<vmem>>) attributes {dimension_semantics = [#tpu.dimension_semantics<parallel>], iteration_bounds = array<i64: 2>, scalar_prefetch = 0 : i64, scratch_operands = 0 : i64, tpu.core_type = #tpu.core_type<tc>, window_params = [{transform_indices = @transform_0, window_bounds = array<i64: 1, 8, 512>}, {transform_indices = @transform_1, window_bounds = array<i64: 1, 512>}]} {
    %c0 = arith.constant 0 : index
    %c0_0 = arith.constant 0 : index
    %c0_1 = arith.constant 0 : index
    %0 = vector.load %arg1[%c0, %c0_0, %c0_1] : memref<1x8x512xf32, #tpu.memory_space<vmem>>, vector<1x8x512xf32>
    %1 = vector.shape_cast %0 : vector<1x8x512xf32> to vector<8x512xf32>
    %cst = arith.constant dense<0.000000e+00> : vector<512xf32>
    %2 = vector.multi_reduction <add>, %1, %cst [0] : vector<8x512xf32> to vector<512xf32>
    %3 = vector.shape_cast %2 : vector<512xf32> to vector<1x512xf32>
    %cst_2 = arith.constant 1.250000e-01 : f32
    %4 = vector.broadcast %cst_2 : f32 to vector<1x512xf32>
    %5 = arith.mulf %3, %4 : vector<1x512xf32>
    %c0_3 = arith.constant 0 : index
    %c0_4 = arith.constant 0 : index
    %6 = vector.load %arg2[%c0_3, %c0_4] : memref<1x512xf32, #tpu.memory_space<vmem>>, vector<1x512xf32>
    tpu.vector_store %arg2[%c0_3, %c0_4], %5 {strides = array<i32>} : memref<1x512xf32, #tpu.memory_space<vmem>>, vector<1x512xf32>,
    return
  }
  func.func @transform_0(%arg0: i32) -> (i32, i32, i32) {
    %c0_i32 = arith.constant 0 : i32
    %c0_i32_0 = arith.constant 0 : i32
    %c0_i32_1 = arith.constant 0 : i32
    return %c0_i32, %c0_i32_0, %arg0 : i32, i32, i32
  }
  func.func @transform_1(%arg0: i32) -> (i32, i32) {
    %c0_i32 = arith.constant 0 : i32
    %c0_i32_0 = arith.constant 0 : i32
    return %c0_i32, %arg0 : i32, i32
  }
}

</mosaic_0001>

<bundles_post_ra>
// kernel: tpu_custom_call.1
= control target key start
LH: loop header
LB: loop body
LE: loop exit
PB: predicated region body
PF: predicated region fallthrough
CT: control target
= control target key end

     0   :  { %6 = vsyncpa [#allocation3], 0  ;;  %s598_s0 = inlined_call_operand.hbm [shape: f32[2,8,1024], index: 0, kind: input, shape index: {}]   ;;  %s599_s1 = inlined_call_operand.hbm [shape: f32[1,1024], index: 1, kind: output, shape index: {}]  }
   0x1   :  { %8 = vsyncpa [#allocation3 + $0x1], 0 }
   0x2   :  { %9 = vsyncpa [#allocation4], 0 }
   0x3   :  { %11 = vsyncpa [#allocation4 + $0x1], 0  ;;  %s456_s6 = smov 0   ;;  %s458_s7 = smov 0  }
   0x4   :  { %s460_s8 = smov 0   ;;  %s462_s9 = smov 0  }
   0x5 LB: > { %s477_s10 = sadd.s32 4294967295, %s441_s9   ;;  %s286_s11 = sadd.s32 4294967294, %s441_s9   ;;  %s441_s9 = sphi %s462_s9, %s616_s9   ;;  %s437_s8 = sphi %s460_s8, %s615_s8   ;;  %s433_s7 = sphi %s458_s7, %s614_s7   ;;  %s429_s6 = sphi %s456_s6, %s613_s6  }
   0x6   : > { %s481_s12 = sadd.s32 1, %s441_s9   ;;  %s24_s13 = sadd.s32 1, %s437_s8 }
   0x7   : > { %s21_s14 = ssub.s32 %s441_s9, %s481_s12  ;;  %p31_p0 = scmp.ne.s32.totalorder %s437_s8, %s433_s7 }
   0x8   : > { %p22_p1 = scmp.eq.s32.totalorder %s21_s14, 0  ;;  %p32_p2 = scmp.eq.s32.totalorder %s441_s9, 0 }
   0x9   : > { %p37_p3 = scmp.ne.s32.totalorder %s433_s7, %s429_s6  ;;  %p38_p4 = scmp.eq.s32.totalorder %s477_s10, 0 }
   0xa   : > { %s493_s15 = scalar_select %p22_p1, %s437_s8, %s24_s13  }
   0xb   : > { %p495_p5 = por %p32_p2, %p31_p0  ;;  %p499_p6 = por %p38_p4, %p37_p3 }
   0xc   : > { %p61_p7 = scmp.eq.s32.totalorder %s477_s10, 1  ;;  %p67_p8 = scmp.eq.s32.totalorder %s286_s11, 1 }
   0xd   : > { %s603_s17 = scalar_select %p499_p6, 1, 0 }
   0xe   : > { %p314_p10 = scmp.lt.s32.totalorder %s441_s9, 2  ;;  %p506_p11 = por %p61_p7, %p31_p0 }
   0xf   : > { %p510_p12 = por %p67_p8, %p37_p3  ;;  %s87_s20 = sand.u32 1, %s437_s8  }
  0x10   : > { %s604_s18 = scalar_select %p506_p11, 1, 0 }
  0x11   : > { %s605_s19 = scalar_select %p510_p12, 1, 0 }
  0x12   : > { %s300_s21 = sshll.u32 %s441_s9, 9  ;;  %s289_s22 = sshll.u32 %s87_s20, 5 }
  0x13   : > { %s519_s25 = scalar_lea.hbm %s598_s0, %s300_s21  ;;  %s91_s26 = scalar_lea.vmem [#allocation2], %s289_s22 }
  0x14   : > { %s99_s27 = sshll.u32 %s91_s26, 4  ;;  %p523_p13 = pnand %p314_p10, %p495_p5  ;;  %s527_s27 = int_to_ptr.vmem [resolvable:$true] %s99_s27 }
  0x15   : > { %s88_s29 = scalar_lea.sflag [#allocation3], %s87_s20  ;;  %s349_s30 = scalar_lea.hbm %s519_s25, 512 }
  0x16   : > { %p350_p2 = scmp.ne.s32.totalorder %s519_s25, %s349_s30  ;;  %p351_p3 = pneg %p523_p13 }
  0x17   : > { %s354_s4 = scalar_lea.hbm %s598_s0, 2048  ;;  %p355_p5 = scmp.lt.s32.totalorder %s519_s25, %s598_s0 }
  0x18   : > { %p352_p4 = pnand %p351_p3, %p350_p2  ;;  %p356_p8 = scmp.lt.s32.totalorder %s354_s4, %s349_s30 }
  0x1a   : > { %p353_p7 = pneg %p352_p4  ;;  %p357_p10 = por %p356_p8, %p355_p5 }
  0x1c   : > { %p358_p9 = pnand %p357_p10, %p353_p7 }
  0x1e   : > { %361 = shalt.err (!%p358_p9)
}
  0x1f   : > { %s362_s13 = scalar_lea.vmem %s527_s27, 512  ;;  %s443_s14 = smov [#allocation2]  }
  0x20   : > { %p363_p0 = scmp.ne.s32.totalorder %s527_s27, %s362_s13  ;;  %s367_s16 = sshll.u32 %s443_s14, 4  ;;  %s368_s16 = int_to_ptr.vmem [resolvable:$false] %s367_s16 }
  0x21   : > { %s369_s20 = scalar_lea.vmem %s368_s16, 1024  ;;  %p370_p4 = scmp.lt.s32.totalorder %s527_s27, %s368_s16 }
  0x22   : > { %p365_p1 = pnand %p363_p0, %p351_p3  ;;  %p371_p12 = scmp.lt.s32.totalorder %s369_s20, %s362_s13 }
  0x24   : > { %p366_p2 = pneg %p365_p1  ;;  %p372_p11 = por %p371_p12, %p370_p4 }
  0x26   : > { %p373_p6 = pnand %p372_p11, %p366_p2 }
  0x28   : > { %376 = shalt.err (!%p373_p6)
}
  0x29   : > { %309 = dma.hbm_to_vmem [thread:$0]  (!%p523_p13), %s519_s25, 512, %s527_s27, %s88_s29  }
  0x2a   : > { %p607_p9 = scmp.lt.s32.totalorder %s441_s9, 3  ;;  %p608_p7 = scmp.ge.s32.totalorder %s441_s9, 1 }
  0x2c   : > { %p105_p0 = pnand %p608_p7, %p607_p9 }
  0x2d   : > { %s554_s21 = sand.u32 (!%p105_p0), 1, %s433_s7   ;;  %p609_p6 = scmp.ne.s32.totalorder (!%p105_p0), %s603_s17, 0 }
  0x2e   : > { %108 = sbr.rel (%p105_p0) target bundleno = 89 (0x59), region = 24  ;;  %s293_s22 = sshll.u32 (!%p105_p0), %s554_s21, 5 }
  0x2f   : > { %s111_s23 = scalar_lea.sflag (!%p105_p0), [#allocation3], %s554_s21  ;;  %s114_s24 = scalar_lea.vmem (!%p105_p0), [#allocation2], %s293_s22 }
  0x33   : > { %420 = dma.done.wait (%p609_p6), %s111_s23, 512  }
  0x34   : > { %422 = vsyncadd (%p609_p6), %s111_s23, 4294966784  ;;  %v135_v0 = vld [vmem:[%s114_s24] sm:$0xff]  ;;  %v136_v1 = vld [vmem:[%s114_s24 + $0x8] sm:$0xff]  ;;  %v176_v12 = vlaneseq  ;;  %v444_v16 = vmov 1966171168   ;;  %s294_s17 = sshll.u32 %s554_s21, 2 }
  0x35   : > { %v137_v2 = vld [vmem:[%s114_s24 + $0x10] sm:$0xff]  ;;  %v138_v3 = vld [vmem:[%s114_s24 + $0x18] sm:$0xff]  ;;  %v139_v4 = vrot.slane %v135_v0, 4  ;;  %v145_v5 = vrot.slane %v136_v1, 4  ;;  %v174_v17 = vunpack.c.l.s4 %v444_v16  ;;  %s132_s25 = scalar_lea.vmem [#allocation5], %s294_s17  ;;  %s301_s27 = sshll.u32 %s477_s10, 6 }
  0x36   : > { %v151_v6 = vrot.slane %v137_v2, 4  ;;  %v157_v7 = vrot.slane %v138_v3, 4  ;;  %v177_v23 = vshrl.u32 %v176_v12, 7  ;;  %s216_s26 = sshll.u32 %s132_s25, 4  ;;  %vm198_vm0 = vcmp.lt.s32.totalorder %v176_v12, 512  ;;  %s214_s30 = scalar_lea.hbm %s599_s1, %s301_s27  ;;  %s217_s26 = int_to_ptr.vmem [resolvable:$true] %s216_s26 }
  0x37   : > { %v140_v8 = vadd.f32 %v139_v4, %v135_v0  ;;  %v146_v9 = vadd.f32 %v145_v5, %v136_v1  ;;  %v175_v27 = vunpack.c.0.s8 %v174_v17  ;;  %s202_s2 = scalar_lea.sflag [#allocation4], %s554_s21  ;;  %s377_s3 = scalar_lea.vmem %s217_s26, 64 }
  0x38   : > { %v152_v10 = vadd.f32 %v151_v6, %v137_v2  ;;  %v158_v11 = vadd.f32 %v157_v7, %v138_v3  ;;  %p378_p11 = scmp.ne.s32.totalorder %s217_s26, %s377_s3  ;;  %p610_p12 = scmp.ne.s32.totalorder %s604_s18, 0 }
  0x39   : > { %v141_v13 = vrot.slane %v140_v8, 2  ;;  %v147_v14 = vrot.slane %v146_v9, 2  ;;  %v178_v36 = vsub.s32 %v175_v27, %v177_v23  ;;  %s445_s4 = smov [#allocation5]  }
  0x3a   : > { %v153_v15 = vrot.slane %v152_v10, 2  ;;  %v159_v18 = vrot.slane %v158_v11, 2  ;;  %p379_p13 = pnand %p378_p11, %p610_p12  ;;  %s381_s5 = sshll.u32 %s445_s4, 4  ;;  %s382_s5 = int_to_ptr.vmem [resolvable:$false] %s381_s5 }
  0x3b   : > { %v142_v19 = vadd.f32 %v141_v13, %v140_v8  ;;  %v148_v20 = vadd.f32 %v147_v14, %v146_v9  ;;  %s383_s11 = scalar_lea.vmem %s382_s5, 128  ;;  %p384_p3 = scmp.lt.s32.totalorder %s217_s26, %s382_s5 }
  0x3c   : > { %v154_v21 = vadd.f32 %v153_v15, %v152_v10  ;;  %v160_v22 = vadd.f32 %v159_v18, %v158_v11  ;;  %p380_p1 = pneg %p379_p13  ;;  %p385_p5 = scmp.lt.s32.totalorder %s383_s11, %s377_s3 }
  0x3d   : > { %v143_v24 = vrot.slane %v142_v19, 1  ;;  %v149_v25 = vrot.slane %v148_v20, 1 }
  0x3e   : > { %v155_v26 = vrot.slane %v154_v21, 1  ;;  %v161_v28 = vrot.slane %v160_v22, 1  ;;  %p386_p8 = por %p385_p5, %p384_p3 }
  0x3f   : > { %v144_v29 = vadd.f32 %v143_v24, %v142_v19  ;;  %v150_v30 = vadd.f32 %v149_v25, %v148_v20 }
  0x40   : > { %v156_v31 = vadd.f32 %v155_v26, %v154_v21  ;;  %v162_v32 = vadd.f32 %v161_v28, %v160_v22  ;;  %p387_p10 = pnand %p386_p8, %p380_p1 }
  0x41   : > { %v163_v33 = vmul.f32 0.125, %v144_v29  ;;  %v164_v34 = vmul.f32 0.125, %v150_v30 }
  0x42   : > { %v165_v35 = vmul.f32 0.125, %v156_v31  ;;  %v166_v37 = vmul.f32 0.125, %v162_v32 }
  0x43   : > { %v171_v38 = vcombine.low %v163_v33, %v164_v34 }
  0x44   : > { %v172_v39 = vcombine.low %v165_v35, %v166_v37 }
  0x45   : > { %v179_v40 = vrot.slane %v171_v38, %v178_v36 }
  0x46   : > { %v186_v41 = vrot.slane %v172_v39, %v178_v36 }
  0x48   : > { %v187_v42 = vcombine.low %v179_v40, %v186_v41 }
  0x4a   : > { %v194_v43 = vrot.slane %v187_v42, %v178_v36 }
  0x4c   : > { %200 = vst.msk [vmem:[%s132_s25] sm:$0xf] %vm198_vm0, %v194_v43 }
  0x4d   : > { %390 = shalt.err (!%p387_p10)
}
  0x4e   : > { %s391_s10 = scalar_lea.hbm %s214_s30, 64  ;;  %s395_s16 = scalar_lea.hbm %s599_s1, 128 }
  0x4f   : > { %p392_p2 = scmp.ne.s32.totalorder %s214_s30, %s391_s10  ;;  %p396_p7 = scmp.lt.s32.totalorder %s214_s30, %s599_s1 }
  0x50   : > { %p397_p0 = scmp.lt.s32.totalorder %s395_s16, %s391_s10 }
  0x51   : > { %p393_p4 = pnand %p392_p2, %p610_p12 }
  0x52   : > { %p398_p6 = por %p397_p0, %p396_p7 }
  0x53   : > { %p394_p9 = pneg %p393_p4 }
  0x55   : > { %p399_p11 = pnand %p398_p6, %p394_p9 }
  0x57   : > { %402 = shalt.err (!%p399_p11)
}
  0x58   : > { %304 = dma.vmem_to_hbm [thread:$0]  (%p610_p12), %s217_s26, 64, %s214_s30, %s202_s2  }
  0x59 PF: > { %s228_s22 = sand.u32 1, %s429_s6   ;;  %p611_p13 = scmp.ne.s32.totalorder %s605_s19, 0 }
  0x5a   : > { %p612_p1 = scmp.ge.s32.totalorder %s441_s9, 2  ;;  %s229_s23 = scalar_lea.sflag [#allocation4], %s228_s22 }
  0x5c   : > { %p311_p3 = pnand %p612_p1, %p611_p13 }
  0x5e   : > { %p312_p5 = pneg %p311_p3 }
  0x60   : > { %424 = dma.done.wait (%p312_p5), %s229_s23, 64  }
  0x61   : > { %426 = vsyncadd (%p312_p5), %s229_s23, 4294967232  ;;  %p14_p8 = scmp.ge.s32.totalorder %s481_s12, 4   ;;  %s613_s6 = smov %s433_s7 }
  0x62   : > { %s614_s7 = smov %s437_s8  ;;  %s615_s8 = smov %s493_s15 }
  0x63   : > { %s616_s9 = smov %s481_s12  ;;  %16 = sbr.rel (!%p14_p8) target bundleno = 5 (0x5), region = 69 }
  0x68   :  { %234 = vsyncpa [#allocation3], 1 }
  0x69   :  { %236 = vsyncpa [#allocation3 + $0x1], 1 }
  0x6a   :  { %237 = vsyncpa [#allocation4], 1 }
  0x6b   :  { %239 = vsyncpa [#allocation4 + $0x1], 1 }

</bundles_post_ra>
